<compile_context>
chip_gen: v5e
topology: v5e:2x2
jax: 0.10.0
libtpu: 0.0.40
codegen_flags: <defaults>
</compile_context>

<pallas_src>
import math
import functools

import jax
import jax.numpy as jnp
from jax import lax
from jax.experimental import pallas as pl
from jax.experimental.pallas import tpu as pltpu


def _arc_margin_kernel(
    x_ref, w_ref, lab_ref,            # inputs
    out_ref, loss_ref,                # outputs (logits tile, scalar loss)
    inv_x_s, m_s, l_s, picked_s,      # VMEM scratch, persistent across tiles
    *, s, cos_m, sin_m, n_classes, c_padded, class_tile, mxu_dtype, batch,
):
    j = pl.program_id(0)
    n_tiles = pl.num_programs(0)

    # ---- first class tile: init per-row accumulators + row inverse-norms ----
    @pl.when(j == 0)
    def _init():
        x32 = x_ref[...].astype(jnp.float32)
        inv_x_s[...] = lax.rsqrt(
            jnp.maximum(jnp.sum(x32 * x32, axis=1, keepdims=True), 1e-24))
        m_s[...] = jnp.full(m_s.shape, -1e30, jnp.float32)   # running max
        l_s[...] = jnp.zeros_like(l_s)                        # running sum-exp
        picked_s[...] = jnp.zeros_like(picked_s)              # s*phi at label

    # ---- cosine for this class tile: normalize AFTER the matmul ----
    w_tile = w_ref[...]                                        # (D, TC)
    w32 = w_tile.astype(jnp.float32)
    inv_w = lax.rsqrt(
        jnp.maximum(jnp.sum(w32 * w32, axis=0, keepdims=True), 1e-24))  # (1,TC)

    raw = jnp.dot(
        x_ref[...].astype(mxu_dtype), w_tile.astype(mxu_dtype),
        preferred_element_type=jnp.float32)                    # (B, TC) f32
    cosine = jnp.clip(raw * inv_x_s[...] * inv_w, -1.0, 1.0)

    # ---- arc-margin: phi only on the per-row label cosine ----
    lab = lab_ref[...]                                         # (B, 1) int32
    start = j * class_tile
    class_ids = start + lax.broadcasted_iota(jnp.int32, cosine.shape, 1)
    match = class_ids == lab                                   # (B, TC) bool
    has_label = jnp.logical_and(lab >= start, lab < start + class_tile)  # (B,1)

    cos_l = jnp.sum(jnp.where(match, cosine, 0.0), axis=1, keepdims=True)  # (B,1)
    sin_l = jnp.sqrt(jnp.maximum(1.0 - cos_l * cos_l, 1e-07))
    s_phi = s * (cos_l * cos_m - sin_l * sin_m)                # (B, 1)

    out_tile = jnp.where(match, s_phi, s * cosine)             # single vselect
    out_ref[...] = out_tile.astype(out_ref.dtype)

    # "picked" logit for cross-entropy: reuse s*phi (only in the label's tile)
    picked_s[...] += jnp.where(has_label, s_phi, 0.0)

    # ---- online logsumexp over class tiles (mask padded columns) ----
    if c_padded != n_classes:
        logits = jnp.where(class_ids < n_classes, out_tile, -1e30)
    else:
        logits = out_tile

    row_max = jnp.max(logits, axis=1, keepdims=True)
    m_new = jnp.maximum(m_s[...], row_max)
    l_s[...] = (l_s[...] * jnp.exp(m_s[...] - m_new)
                + jnp.sum(jnp.exp(logits - m_new), axis=1, keepdims=True))
    m_s[...] = m_new

    # ---- finalize loss on the last class tile ----
    @pl.when(j == n_tiles - 1)
    def _finalize():
        lse = m_s[...] + jnp.log(l_s[...])                     # (B, 1)
        loss = jnp.sum(lse - picked_s[...]) * (1.0 / batch)
        loss_ref[0, 0] = loss


def arc_margin_forward(x, weight, label, *, s=32.0, m=0.5,
                       class_tile=128, mxu_dtype=jnp.bfloat16):
    """ArcMarginProduct.forward: returns (output logits [B,C] f32, scalar loss).

    class_tile: lane tile over the class axis (multiple of 128; use 256 on
    v6e/v7x for a 256-wide MXU, keep modest on v7x's 64 MiB VMEM).
    """
    B, D = x.shape
    D2, C = weight.shape
    assert D == D2
    label2d = label.reshape(B, 1).astype(jnp.int32)

    # Pad class axis to a multiple of the tile (zero columns are masked out of
    # the loss inside the kernel and sliced off the returned logits).
    c_pad = ((C + class_tile - 1) // class_tile) * class_tile
    w_padded = jnp.pad(weight, ((0, 0), (0, c_pad - C))) if c_pad != C else weight
    n_tiles = c_pad // class_tile

    kernel = functools.partial(
        _arc_margin_kernel,
        s=float(s), cos_m=math.cos(m), sin_m=math.sin(m),
        n_classes=C, c_padded=c_pad, class_tile=class_tile,
        mxu_dtype=mxu_dtype, batch=B,
    )

    out, loss = pl.pallas_call(
        kernel,
        out_shape=(
            jax.ShapeDtypeStruct((B, c_pad), jnp.float32),
            jax.ShapeDtypeStruct((1, 1), jnp.float32),
        ),
        grid_spec=pltpu.PrefetchScalarGridSpec(
            num_scalar_prefetch=0,
            grid=(n_tiles,),
            in_specs=[
                pl.BlockSpec((B, D), lambda j: (0, 0)),            # x (resident)
                pl.BlockSpec((D, class_tile), lambda j: (0, j)),   # weight tile
                pl.BlockSpec((B, 1), lambda j: (0, 0)),            # labels
            ],
            out_specs=[
                pl.BlockSpec((B, class_tile), lambda j: (0, j)),   # logits tile
                pl.BlockSpec((1, 1), lambda j: (0, 0),
                             memory_space=pltpu.MemorySpace.SMEM),  # scalar loss
            ],
            scratch_shapes=[
                pltpu.VMEM((B, 1), jnp.float32),  # inv row-norm of x
                pltpu.VMEM((B, 1), jnp.float32),  # running max (logsumexp)
                pltpu.VMEM((B, 1), jnp.float32),  # running sum-exp
                pltpu.VMEM((B, 1), jnp.float32),  # picked logit (s*phi at label)
            ],
        ),
        compiler_params=pltpu.CompilerParams(
            # Class axis carries the loss accumulator -> must stay "arbitrary".
            dimension_semantics=("arbitrary",),
        ),
    )(x, w_padded, label2d)

    return out[:, :C], loss[0, 0]


def init_weight(key, n_output, n_classes):
    # nn.init.xavier_uniform_ on a (n_output, n_classes) tensor.
    bound = math.sqrt(6.0 / (n_output + n_classes))
    w = jax.random.uniform(
        key, (n_output, n_classes), dtype=jnp.float32, minval=-bound, maxval=bound)
    # weight.data.renorm_(2, 1, 1e-05).mul_(100000.0): columns ~unit L2 norm.
    col_norm = jnp.sqrt(jnp.sum(w * w, axis=0, keepdims=True))
    scale = jnp.where(col_norm > 1e-05, 1e-05 / col_norm, 1.0)
    return w * scale * 100000.0


if __name__ == "__main__":
    B, D, C = 8, 32, 200   # batch, feature dim, n_classes (C not a tile multiple)
    S_SCALE, MARGIN = 32.0, 0.5

    key = jax.random.PRNGKey(0)
    kx, kw, kl = jax.random.split(key, 3)
    x = jax.random.normal(kx, (B, D), dtype=jnp.float32)
    weight = init_weight(kw, D, C)
    label = jax.random.randint(kl, (B,), 0, C, dtype=jnp.int32)

    out, loss = arc_margin_forward(x, weight, label, s=S_SCALE, m=MARGIN)
    jax.block_until_ready((out, loss))

    # --- Reference A (tight): same structure as the kernel (bf16 MXU inputs,
    #     post-matmul normalization, f32 accumulation). Checks kernel numerics.
    inv_xn = lax.rsqrt(jnp.maximum(jnp.sum(x * x, axis=1, keepdims=True), 1e-24))
    inv_wn = lax.rsqrt(jnp.maximum(jnp.sum(weight * weight, axis=0, keepdims=True), 1e-24))
    raw = jnp.dot(x.astype(jnp.bfloat16), weight.astype(jnp.bfloat16),
                  preferred_element_type=jnp.float32)
    cosA = jnp.clip(raw * inv_xn * inv_wn, -1.0, 1.0)
    sinA = jnp.sqrt(jnp.maximum(1.0 - cosA * cosA, 1e-07))
    phiA = cosA * math.cos(MARGIN) - sinA * math.sin(MARGIN)
    oh = jax.nn.one_hot(label, C, dtype=jnp.float32)
    refA_out = jnp.where(oh > 0, S_SCALE * phiA, S_SCALE * cosA)
    refA_loss = jnp.mean(jax.nn.logsumexp(refA_out, axis=1)
                         - jnp.sum(oh * refA_out, axis=1))
    assert jnp.allclose(out, refA_out, atol=2e-3, rtol=2e-3), "output mismatch (tight)"
    assert jnp.allclose(loss, refA_loss, atol=2e-3, rtol=2e-3), "loss mismatch (tight)"

    # --- Reference B (loose): pure-f32 PyTorch semantics; bound only reflects
    #     bf16 rounding of the MXU inputs (|d cos| <= ~2^-8, scaled by s=32).
    x_n = x / jnp.maximum(jnp.linalg.norm(x, axis=1, keepdims=True), 1e-12)
    w_n = weight / jnp.maximum(jnp.linalg.norm(weight, axis=0, keepdims=True), 1e-12)
    cosB = jnp.clip(x_n @ w_n, -1.0, 1.0)
    sinB = jnp.sqrt(jnp.maximum(1.0 - cosB * cosB, 1e-07))
    phiB = cosB * math.cos(MARGIN) - sinB * math.sin(MARGIN)
    refB_out = (oh * phiB + (1.0 - oh) * cosB) * S_SCALE
    refB_loss = jnp.mean(jax.nn.logsumexp(refB_out, axis=1)
                         - jnp.sum(oh * refB_out, axis=1))
    assert jnp.max(jnp.abs(out - refB_out)) < 0.3, "output mismatch (f32 semantics)"
    assert jnp.abs(loss - refB_loss) < 0.5, "loss mismatch (f32 semantics)"

    print("KERNEL_OK")
</pallas_src>

<mosaic_0001>
module attributes {stable_mosaic.version = 11 : i64} {
  func.func @_arc_margin_kernel(%arg0: i32, %arg1: memref<8x32xf32, #tpu.memory_space<vmem>>, %arg2: memref<32x128xf32, #tpu.memory_space<vmem>>, %arg3: memref<8x1xi32, #tpu.memory_space<vmem>>, %arg4: memref<8x128xf32, #tpu.memory_space<vmem>>, %arg5: memref<1x1xf32, #tpu.memory_space<smem>>, %arg6: memref<8x1xf32, #tpu.memory_space<vmem>>, %arg7: memref<8x1xf32, #tpu.memory_space<vmem>>, %arg8: memref<8x1xf32, #tpu.memory_space<vmem>>, %arg9: memref<8x1xf32, #tpu.memory_space<vmem>>) attributes {dimension_semantics = [#tpu.dimension_semantics<arbitrary>], iteration_bounds = array<i64: 2>, scalar_prefetch = 0 : i64, scratch_operands = 4 : i64, tpu.core_type = #tpu.core_type<tc>, window_params = [{pipeline_mode = #tpu.pipeline_mode<synchronous>, transform_indices = @transform_0, window_bounds = array<i64: 8, 32>}, {transform_indices = @transform_1, window_bounds = array<i64: 32, 128>}, {pipeline_mode = #tpu.pipeline_mode<synchronous>, transform_indices = @transform_2, window_bounds = array<i64: 8, 1>}, {transform_indices = @transform_3, window_bounds = array<i64: 8, 128>}, {transform_indices = @transform_4, window_bounds = array<i64: 1, 1>}]} {
    %c0_i32 = arith.constant 0 : i32
    %0 = arith.cmpi eq, %arg0, %c0_i32 : i32
    %1 = arith.extui %0 : i1 to i32
    %c0_i32_0 = arith.constant 0 : i32
    %2 = arith.cmpi ne, %1, %c0_i32_0 : i32
    scf.if %2 {
      %c0_42 = arith.constant 0 : index
      %c0_43 = arith.constant 0 : index
      %88 = vector.load %arg1[%c0_42, %c0_43] : memref<8x32xf32, #tpu.memory_space<vmem>>, vector<8x32xf32>
      %89 = arith.mulf %88, %88 : vector<8x32xf32>
      %cst_44 = arith.constant dense<0.000000e+00> : vector<8xf32>
      %90 = vector.multi_reduction <add>, %89, %cst_44 [1] : vector<8x32xf32> to vector<8xf32>
      %91 = vector.shape_cast %90 : vector<8xf32> to vector<8x1xf32>
      %cst_45 = arith.constant 1.000000e-24 : f32
      %92 = vector.broadcast %cst_45 : f32 to vector<8x1xf32>
      %93 = arith.maximumf %91, %92 : vector<8x1xf32>
      %94 = math.rsqrt %93 : vector<8x1xf32>
      %c0_46 = arith.constant 0 : index
      %c0_47 = arith.constant 0 : index
      %95 = vector.load %arg6[%c0_46, %c0_47] : memref<8x1xf32, #tpu.memory_space<vmem>>, vector<8x1xf32>
      tpu.vector_store %arg6[%c0_46, %c0_47], %94 {strides = array<i32>} : memref<8x1xf32, #tpu.memory_space<vmem>>, vector<8x1xf32>,
      %cst_48 = arith.constant -1.000000e+30 : f32
      %96 = vector.broadcast %cst_48 : f32 to vector<8x1xf32>
      %c0_49 = arith.constant 0 : index
      %c0_50 = arith.constant 0 : index
      %97 = vector.load %arg7[%c0_49, %c0_50] : memref<8x1xf32, #tpu.memory_space<vmem>>, vector<8x1xf32>
      tpu.vector_store %arg7[%c0_49, %c0_50], %96 {strides = array<i32>} : memref<8x1xf32, #tpu.memory_space<vmem>>, vector<8x1xf32>,
      %cst_51 = arith.constant 0.000000e+00 : f32
      %98 = vector.broadcast %cst_51 : f32 to vector<8x1xf32>
      %c0_52 = arith.constant 0 : index
      %c0_53 = arith.constant 0 : index
      %99 = vector.load %arg8[%c0_52, %c0_53] : memref<8x1xf32, #tpu.memory_space<vmem>>, vector<8x1xf32>
      tpu.vector_store %arg8[%c0_52, %c0_53], %98 {strides = array<i32>} : memref<8x1xf32, #tpu.memory_space<vmem>>, vector<8x1xf32>,
      %cst_54 = arith.constant 0.000000e+00 : f32
      %100 = vector.broadcast %cst_54 : f32 to vector<8x1xf32>
      %c0_55 = arith.constant 0 : index
      %c0_56 = arith.constant 0 : index
      %101 = vector.load %arg9[%c0_55, %c0_56] : memref<8x1xf32, #tpu.memory_space<vmem>>, vector<8x1xf32>
      tpu.vector_store %arg9[%c0_55, %c0_56], %100 {strides = array<i32>} : memref<8x1xf32, #tpu.memory_space<vmem>>, vector<8x1xf32>,
    } else {
    }
    %c0 = arith.constant 0 : index
    %c0_1 = arith.constant 0 : index
    %3 = vector.load %arg2[%c0, %c0_1] : memref<32x128xf32, #tpu.memory_space<vmem>>, vector<32x128xf32>
    %4 = arith.mulf %3, %3 : vector<32x128xf32>
    %cst = arith.constant dense<0.000000e+00> : vector<128xf32>
    %5 = vector.multi_reduction <add>, %4, %cst [0] : vector<32x128xf32> to vector<128xf32>
    %6 = vector.shape_cast %5 : vector<128xf32> to vector<1x128xf32>
    %cst_2 = arith.constant 1.000000e-24 : f32
    %7 = vector.broadcast %cst_2 : f32 to vector<1x128xf32>
    %8 = arith.maximumf %6, %7 : vector<1x128xf32>
    %9 = math.rsqrt %8 : vector<1x128xf32>
    %c0_3 = arith.constant 0 : index
    %c0_4 = arith.constant 0 : index
    %10 = vector.load %arg1[%c0_3, %c0_4] : memref<8x32xf32, #tpu.memory_space<vmem>>, vector<8x32xf32>
    %11 = arith.truncf %10 : vector<8x32xf32> to vector<8x32xbf16>
    %12 = arith.truncf %3 : vector<32x128xf32> to vector<32x128xbf16>
    %cst_5 = arith.constant dense<0.000000e+00> : vector<8x128xf32>
    %13 = tpu.matmul %11, %12, %cst_5 {dimension_numbers = #tpu.dot_dimension_numbers<[1], [0], [0], [1], [0, 0, 1, 1], [], []>} : vector<8x32xbf16>, vector<32x128xbf16>, vector<8x128xf32> -> vector<8x128xf32>
    %c0_6 = arith.constant 0 : index
    %c0_7 = arith.constant 0 : index
    %14 = vector.load %arg6[%c0_6, %c0_7] : memref<8x1xf32, #tpu.memory_space<vmem>>, vector<8x1xf32>
    %15 = vector.broadcast %14 : vector<8x1xf32> to vector<8x128xf32>
    %16 = arith.mulf %13, %15 : vector<8x128xf32>
    %17 = vector.broadcast %9 : vector<1x128xf32> to vector<8x128xf32>
    %18 = arith.mulf %16, %17 : vector<8x128xf32>
    %cst_8 = arith.constant -1.000000e+00 : f32
    %cst_9 = arith.constant 1.000000e+00 : f32
    %19 = vector.broadcast %cst_8 : f32 to vector<8x128xf32>
    %20 = arith.maximumf %19, %18 : vector<8x128xf32>
    %21 = vector.broadcast %cst_9 : f32 to vector<8x128xf32>
    %22 = arith.minimumf %21, %20 : vector<8x128xf32>
    %c0_10 = arith.constant 0 : index
    %c0_11 = arith.constant 0 : index
    %23 = vector.load %arg3[%c0_10, %c0_11] : memref<8x1xi32, #tpu.memory_space<vmem>>, vector<8x1xi32>
    %c128_i32 = arith.constant 128 : i32
    %24 = arith.muli %arg0, %c128_i32 : i32
    %25 = tpu.iota {dimensions = array<i32: 1>} : vector<8x128xi32>
    %26 = vector.broadcast %24 : i32 to vector<8x128xi32>
    %27 = arith.addi %26, %25 : vector<8x128xi32>
    %28 = vector.broadcast %23 : vector<8x1xi32> to vector<8x128xi32>
    %29 = arith.cmpi eq, %27, %28 : vector<8x128xi32>
    %30 = vector.broadcast %24 : i32 to vector<8x1xi32>
    %31 = arith.cmpi sge, %23, %30 : vector<8x1xi32>
    %c128_i32_12 = arith.constant 128 : i32
    %32 = arith.addi %24, %c128_i32_12 : i32
    %33 = vector.broadcast %32 : i32 to vector<8x1xi32>
    %34 = arith.cmpi slt, %23, %33 : vector<8x1xi32>
    %35 = arith.andi %31, %34 : vector<8x1xi1>
    %cst_13 = arith.constant 0.000000e+00 : f32
    %36 = vector.broadcast %cst_13 : f32 to vector<8x128xf32>
    %37 = arith.select %29, %22, %36 : vector<8x128xi1>, vector<8x128xf32>
    %cst_14 = arith.constant dense<0.000000e+00> : vector<8xf32>
    %38 = vector.multi_reduction <add>, %37, %cst_14 [1] : vector<8x128xf32> to vector<8xf32>
    %39 = vector.shape_cast %38 : vector<8xf32> to vector<8x1xf32>
    %40 = arith.mulf %39, %39 : vector<8x1xf32>
    %cst_15 = arith.constant 1.000000e+00 : f32
    %41 = vector.broadcast %cst_15 : f32 to vector<8x1xf32>
    %42 = arith.subf %41, %40 : vector<8x1xf32>
    %cst_16 = arith.constant 1.000000e-07 : f32
    %43 = vector.broadcast %cst_16 : f32 to vector<8x1xf32>
    %44 = arith.maximumf %42, %43 : vector<8x1xf32>
    %45 = math.sqrt %44 : vector<8x1xf32>
    %cst_17 = arith.constant 0.87758255 : f32
    %46 = vector.broadcast %cst_17 : f32 to vector<8x1xf32>
    %47 = arith.mulf %39, %46 : vector<8x1xf32>
    %cst_18 = arith.constant 0.47942555 : f32
    %48 = vector.broadcast %cst_18 : f32 to vector<8x1xf32>
    %49 = arith.mulf %45, %48 : vector<8x1xf32>
    %50 = arith.subf %47, %49 : vector<8x1xf32>
    %cst_19 = arith.constant 3.200000e+01 : f32
    %51 = vector.broadcast %cst_19 : f32 to vector<8x1xf32>
    %52 = arith.mulf %51, %50 : vector<8x1xf32>
    %cst_20 = arith.constant 3.200000e+01 : f32
    %53 = vector.broadcast %cst_20 : f32 to vector<8x128xf32>
    %54 = arith.mulf %53, %22 : vector<8x128xf32>
    %55 = vector.shape_cast %52 : vector<8x1xf32> to vector<8x1xf32>
    %56 = vector.broadcast %55 : vector<8x1xf32> to vector<8x128xf32>
    %57 = arith.select %29, %56, %54 : vector<8x128xi1>, vector<8x128xf32>
    %c0_21 = arith.constant 0 : index
    %c0_22 = arith.constant 0 : index
    %58 = vector.load %arg4[%c0_21, %c0_22] : memref<8x128xf32, #tpu.memory_space<vmem>>, vector<8x128xf32>
    tpu.vector_store %arg4[%c0_21, %c0_22], %57 {strides = array<i32>} : memref<8x128xf32, #tpu.memory_space<vmem>>, vector<8x128xf32>,
    %c0_23 = arith.constant 0 : index
    %c0_24 = arith.constant 0 : index
    %59 = vector.load %arg9[%c0_23, %c0_24] : memref<8x1xf32, #tpu.memory_space<vmem>>, vector<8x1xf32>
    %cst_25 = arith.constant 0.000000e+00 : f32
    %60 = vector.broadcast %cst_25 : f32 to vector<8x1xf32>
    %61 = arith.select %35, %52, %60 : vector<8x1xi1>, vector<8x1xf32>
    %62 = arith.addf %59, %61 : vector<8x1xf32>
    %c0_26 = arith.constant 0 : index
    %c0_27 = arith.constant 0 : index
    %63 = vector.load %arg9[%c0_26, %c0_27] : memref<8x1xf32, #tpu.memory_space<vmem>>, vector<8x1xf32>
    tpu.vector_store %arg9[%c0_26, %c0_27], %62 {strides = array<i32>} : memref<8x1xf32, #tpu.memory_space<vmem>>, vector<8x1xf32>,
    %c200_i32 = arith.constant 200 : i32
    %64 = vector.broadcast %c200_i32 : i32 to vector<8x128xi32>
    %65 = arith.cmpi slt, %27, %64 : vector<8x128xi32>
    %cst_28 = arith.constant -1.000000e+30 : f32
    %66 = vector.broadcast %cst_28 : f32 to vector<8x128xf32>
    %67 = arith.select %65, %57, %66 : vector<8x128xi1>, vector<8x128xf32>
    %cst_29 = arith.constant dense<0xFF800000> : vector<8xf32>
    %68 = vector.multi_reduction <maximumf>, %67, %cst_29 [1] : vector<8x128xf32> to vector<8xf32>
    %69 = vector.shape_cast %68 : vector<8xf32> to vector<8x1xf32>
    %c0_30 = arith.constant 0 : index
    %c0_31 = arith.constant 0 : index
    %70 = vector.load %arg7[%c0_30, %c0_31] : memref<8x1xf32, #tpu.memory_space<vmem>>, vector<8x1xf32>
    %71 = arith.maximumf %70, %69 : vector<8x1xf32>
    %c0_32 = arith.constant 0 : index
    %c0_33 = arith.constant 0 : index
    %72 = vector.load %arg8[%c0_32, %c0_33] : memref<8x1xf32, #tpu.memory_space<vmem>>, vector<8x1xf32>
    %c0_34 = arith.constant 0 : index
    %c0_35 = arith.constant 0 : index
    %73 = vector.load %arg7[%c0_34, %c0_35] : memref<8x1xf32, #tpu.memory_space<vmem>>, vector<8x1xf32>
    %74 = arith.subf %73, %71 : vector<8x1xf32>
    %75 = math.exp %74 : vector<8x1xf32>
    %76 = arith.mulf %72, %75 : vector<8x1xf32>
    %77 = vector.broadcast %71 : vector<8x1xf32> to vector<8x128xf32>
    %78 = arith.subf %67, %77 : vector<8x128xf32>
    %79 = math.exp %78 : vector<8x128xf32>
    %cst_36 = arith.constant dense<0.000000e+00> : vector<8xf32>
    %80 = vector.multi_reduction <add>, %79, %cst_36 [1] : vector<8x128xf32> to vector<8xf32>
    %81 = vector.shape_cast %80 : vector<8xf32> to vector<8x1xf32>
    %82 = arith.addf %76, %81 : vector<8x1xf32>
    %c0_37 = arith.constant 0 : index
    %c0_38 = arith.constant 0 : index
    %83 = vector.load %arg8[%c0_37, %c0_38] : memref<8x1xf32, #tpu.memory_space<vmem>>, vector<8x1xf32>
    tpu.vector_store %arg8[%c0_37, %c0_38], %82 {strides = array<i32>} : memref<8x1xf32, #tpu.memory_space<vmem>>, vector<8x1xf32>,
    %c0_39 = arith.constant 0 : index
    %c0_40 = arith.constant 0 : index
    %84 = vector.load %arg7[%c0_39, %c0_40] : memref<8x1xf32, #tpu.memory_space<vmem>>, vector<8x1xf32>
    tpu.vector_store %arg7[%c0_39, %c0_40], %71 {strides = array<i32>} : memref<8x1xf32, #tpu.memory_space<vmem>>, vector<8x1xf32>,
    %c1_i32 = arith.constant 1 : i32
    %85 = arith.cmpi eq, %arg0, %c1_i32 : i32
    %86 = arith.extui %85 : i1 to i32
    %c0_i32_41 = arith.constant 0 : i32
    %87 = arith.cmpi ne, %86, %c0_i32_41 : i32
    scf.if %87 {
      %c0_42 = arith.constant 0 : index
      %c0_43 = arith.constant 0 : index
      %88 = vector.load %arg7[%c0_42, %c0_43] : memref<8x1xf32, #tpu.memory_space<vmem>>, vector<8x1xf32>
      %c0_44 = arith.constant 0 : index
      %c0_45 = arith.constant 0 : index
      %89 = vector.load %arg8[%c0_44, %c0_45] : memref<8x1xf32, #tpu.memory_space<vmem>>, vector<8x1xf32>
      %90 = math.log %89 : vector<8x1xf32>
      %91 = arith.addf %88, %90 : vector<8x1xf32>
      %c0_46 = arith.constant 0 : index
      %c0_47 = arith.constant 0 : index
      %92 = vector.load %arg9[%c0_46, %c0_47] : memref<8x1xf32, #tpu.memory_space<vmem>>, vector<8x1xf32>
      %93 = arith.subf %91, %92 : vector<8x1xf32>
      %94 = vector.shape_cast %93 : vector<8x1xf32> to vector<1x8x1xf32>
      %cst_48 = arith.constant dense<0.000000e+00> : vector<1xf32>
      %95 = vector.multi_reduction <add>, %94, %cst_48 [1, 2] : vector<1x8x1xf32> to vector<1xf32>
      %96 = vector.shape_cast %95 : vector<1xf32> to vector<1x1x1xf32>
      %97 = vector.extract %96[0, 0, 0] : f32 from vector<1x1x1xf32>
      %cst_49 = arith.constant 1.250000e-01 : f32
      %98 = arith.mulf %97, %cst_49 : f32
      %c0_50 = arith.constant 0 : index
      %c0_51 = arith.constant 0 : index
      %99 = memref.load %arg5[%c0_50, %c0_51] : memref<1x1xf32, #tpu.memory_space<smem>>
      memref.store %98, %arg5[%c0_50, %c0_51] : memref<1x1xf32, #tpu.memory_space<smem>>
    } else {
    }
    return
  }
  func.func @transform_0(%arg0: i32) -> (i32, i32) {
    %c0_i32 = arith.constant 0 : i32
    %c0_i32_0 = arith.constant 0 : i32
    %c0_i32_1 = arith.constant 0 : i32
    return %c0_i32, %c0_i32_0 : i32, i32
  }
  func.func @transform_1(%arg0: i32) -> (i32, i32) {
    %c0_i32 = arith.constant 0 : i32
    %c0_i32_0 = arith.constant 0 : i32
    return %c0_i32, %arg0 : i32, i32
  }
  func.func @transform_2(%arg0: i32) -> (i32, i32) {
    %c0_i32 = arith.constant 0 : i32
    %c0_i32_0 = arith.constant 0 : i32
    %c0_i32_1 = arith.constant 0 : i32
    return %c0_i32, %c0_i32_0 : i32, i32
  }
  func.func @transform_3(%arg0: i32) -> (i32, i32) {
    %c0_i32 = arith.constant 0 : i32
    %c0_i32_0 = arith.constant 0 : i32
    return %c0_i32, %arg0 : i32, i32
  }
  func.func @transform_4(%arg0: i32) -> (i32, i32) {
    %c0_i32 = arith.constant 0 : i32
    %c0_i32_0 = arith.constant 0 : i32
    %c0_i32_1 = arith.constant 0 : i32
    return %c0_i32, %c0_i32_0 : i32, i32
  }
}

</mosaic_0001>

<bundles_post_ra>
// kernel: tpu_custom_call.1
= control target key start
LH: loop header
LB: loop body
LE: loop exit
PB: predicated region body
PF: predicated region fallthrough
CT: control target
= control target key end

     0   :  { %10 = vsyncpa [#allocation7], 0  ;;  %s917_s0 = inlined_call_operand.vmem [shape: f32[8,32], index: 0, kind: input, shape index: {}]   ;;  %s918_s1 = inlined_call_operand.hbm [shape: f32[32,256], index: 1, kind: input, shape index: {}]   ;;  %s919_s2 = inlined_call_operand.vmem [shape: s32[8,1], index: 2, kind: input, shape index: {}]   ;;  %s920_s3 = inlined_call_operand.hbm [shape: f32[8,256], index: 3, kind: output, shape index: {0}]   ;;  %s921_s4 = inlined_call_operand.hbm [shape: f32[1,1], index: 4, kind: output, shape index: {1}]  }
   0x1   :  { %12 = vsyncpa [#allocation7 + $0x1], 0 }
   0x2   :  { %13 = vsyncpa [#allocation8], 0 }
   0x3   :  { %15 = vsyncpa [#allocation8 + $0x1], 0 }
   0x4   :  { %16 = vsyncpa [#allocation9], 0  ;;  %s748_s15 = smov 0   ;;  %s750_s16 = smov 0  }
   0x5   :  { %s752_s17 = smov 0   ;;  %s754_s18 = smov 0  }
   0x6 LB: > { %s769_s19 = sadd.s32 4294967295, %s714_s18   ;;  %s506_s20 = sadd.s32 4294967294, %s714_s18   ;;  %s714_s18 = sphi %s754_s18, %s931_s18   ;;  %s710_s17 = sphi %s752_s17, %s930_s17   ;;  %s706_s16 = sphi %s750_s16, %s929_s16   ;;  %s702_s15 = sphi %s748_s15, %s928_s15  }
   0x7   : > { %s773_s21 = sadd.s32 1, %s714_s18   ;;  %s50_s22 = sadd.s32 1, %s710_s17 }
   0x8   : > { %s47_s23 = ssub.s32 %s714_s18, %s773_s21  ;;  %p57_p0 = scmp.ne.s32.totalorder %s710_s17, %s706_s16 }
   0x9   : > { %p48_p1 = scmp.eq.s32.totalorder %s47_s23, 0  ;;  %p58_p2 = scmp.eq.s32.totalorder %s714_s18, 0 }
   0xa   : > { %p63_p3 = scmp.ne.s32.totalorder %s706_s16, %s702_s15  ;;  %p64_p4 = scmp.eq.s32.totalorder %s769_s19, 0 }
   0xb   : > { %s785_s24 = scalar_select %p48_p1, %s710_s17, %s50_s22  }
   0xc   : > { %p787_p5 = por %p58_p2, %p57_p0  ;;  %p791_p6 = por %p64_p4, %p63_p3 }
   0xd   : > { %p108_p7 = scmp.eq.s32.totalorder %s769_s19, 1  ;;  %p114_p8 = scmp.eq.s32.totalorder %s506_s20, 1 }
   0xe   : > { %p543_p10 = scmp.lt.s32.totalorder %s714_s18, 2  ;;  %s161_s29 = sand.u32 1, %s710_s17  }
   0xf   : > { %p800_p11 = por %p108_p7, %p57_p0  ;;  %p804_p12 = por %p114_p8, %p63_p3 }
  0x10   : > { %s510_s30 = sshll.u32 %s714_s18, 3  ;;  %s509_s5 = sshll.u32 %s161_s29, 5 }
  0x11   : > { %s169_s8 = scalar_lea.hbm %s918_s1, %s510_s30  ;;  %s165_s10 = scalar_lea.vmem [#allocation6], %s509_s5 }
  0x12   : > { %s170_s9 = sshll.u32 %s169_s8, 4  ;;  %s172_s11 = sshll.u32 %s165_s10, 4  ;;  %s171_s9 = int_to_ptr.hbm [resolvable:$true] %s170_s9  ;;  %s173_s11 = int_to_ptr.vmem [resolvable:$true] %s172_s11 }
  0x13   : > { %p815_p13 = pnand %p543_p10, %p787_p5  ;;  %p511_p0 = scmp.ge.s32.totalorder %s714_s18, 1 }
  0x14   : > { %s162_s13 = scalar_lea.sflag [#allocation7], %s161_s29  ;;  %s600_s14 = sshra.s32 %s171_s9, 4  ;;  %s601_s14 = int_to_ptr.hbm [resolvable:$true] %s600_s14 }
  0x15   : > { %s602_s20 = scalar_lea.hbm %s601_s14, 32  ;;  %p604_p2 = pneg %p815_p13 }
  0x16   : > { %p603_p1 = scmp.ne.s32.totalorder %s601_s14, %s602_s20  ;;  %s607_s30 = scalar_lea.hbm %s918_s1, 64 }
  0x17   : > { %p608_p5 = scmp.lt.s32.totalorder %s601_s14, %s918_s1  ;;  %p609_p8 = scmp.lt.s32.totalorder %s607_s30, %s602_s20 }
  0x18   : > { %p605_p3 = pnand %p604_p2, %p603_p1 }
  0x19   : > { %p610_p10 = por %p609_p8, %p608_p5 }
  0x1a   : > { %p606_p4 = pneg %p605_p3 }
  0x1c   : > { %p611_p9 = pnand %p610_p10, %p606_p4 }
  0x1e   : > { %614 = shalt.err (!%p611_p9)
}
  0x1f   : > { %s716_s29 = smov 256   ;;  %s717_s6 = smov 128  }
  0x20   : > { %s718_s7 = smov 8   ;;  %p180_p1 = scmp.lt.s32.totalorder %s714_s18, 3 }
  0x21   : > { %538 = dma.hbm_to_vmem [thread:$0]  (!%p815_p13), %s171_s9, 512, %s173_s11, %s162_s13, %s716_s29, %s717_s6, %s718_s7  }
  0x22   : > { %p181_p2 = pnand %p511_p0, %p180_p1 }
  0x23   : > { %s834_s8 = sand.u32 (!%p181_p2), 1, %s706_s16  }
  0x24   : > { %184 = sbr.rel (%p181_p2) target bundleno = 1045 (0x415), region = 32  ;;  %s512_s10 = sshll.u32 (!%p181_p2), %s834_s8, 5 }
  0x25   : > { %s187_s14 = scalar_lea.sflag (!%p181_p2), [#allocation7], %s834_s8  ;;  %s838_s20 = scalar_lea.vmem (!%p181_p2), [#allocation6], %s512_s10 }
  0x29   : > { %689 = dma.done.wait (%p791_p6), %s187_s14, 512  }
  0x2a   : > { %691 = vsyncadd (%p791_p6), %s187_s14, 4294966784  ;;  %s513_s9 = sshll.u32 %s834_s8, 3  ;;  %p514_p9 = scmp.ne.s32.totalorder %s769_s19, 0 }
  0x2b   : > { %s845_s11 = scalar_lea.vmem [#allocation10], %s513_s9 }
  0x2c   : > { %220 = sbr.rel (%p514_p9) target bundleno = 190 (0xbe), region = 40 }
  0x31   : > { %v221_v0 = vld [vmem:[%s917_s0] sm:$0xff]  ;;  %vm223_vm0 = vcmask 261120   ;;  %vm238_vm1 = vcmask 7168   ;;  %v719_v3 = vmov -1e+30   ;;  %v720_v4 = vmov 0.0  }
  0x32   : > { %v222_v1 = vmul.f32 %v221_v0, %v221_v0  ;;  %240 = vst.msk [vmem:[#allocation3] sm:$0xff] %vm238_vm1, %v719_v3 }
  0x33   : > { %241 = vst.msk [vmem:[#allocation4] sm:$0xff] %vm238_vm1, %v720_v4 }
  0x34   : > { %v224_v2 = vsel %vm223_vm0, %v222_v1, 0.0  ;;  %242 = vst.msk [vmem:[#allocation5] sm:$0xff] %vm238_vm1, %v720_v4 }
  0x35   : > { %225 = vadd.xlane.f32.xlu0 %v224_v2 }
  0xa8   : > { %v226_v5 = vpop.xlane.xlu0 %225 }
  0xa9   : > { %v227_v6 = vmax.f32 %v226_v5, 1e-24 }
  0xab   : > { %586 = vrsqrt.f32 %v227_v6  ;;  %vm234_vm3 = vweird.f32 %v227_v6 }
  0xb1   : > { %v587_v7 = vpop.eup %586 }
  0xb2   : > { %v229_v8 = vmul.f32 %v587_v7, %v227_v6  ;;  %vm235_vm2 = vweird.f32 %v587_v7 }
  0xb3   : > { %vm236_vm4 = vmor %vm234_vm3, %vm235_vm2 }
  0xb4   : > { %v230_v9 = vmul.f32 %v587_v7, %v229_v8 }
  0xb6   : > { %v231_v10 = vmul.f32 0.5, %v230_v9 }
  0xb8   : > { %v232_v11 = vsub.f32 1.5, %v231_v10 }
  0xba   : > { %v233_v12 = vmul.f32 %v587_v7, %v232_v11 }
  0xbc   : > { %v237_v13 = vsel %vm236_vm4, %v587_v7, %v233_v12 }
  0xbd   : > { %239 = vst.msk [vmem:[#allocation2] sm:$0xff] %vm238_vm1, %v237_v13 }
  0xbe PF: > { %v245_v14 = vld [vmem:[%s838_s20 + $0x10] sm:$0xff]  ;;  %v246_v15 = vld [vmem:[%s838_s20 + $0x18] sm:$0xff]  ;;  %v243_v16 = vld [vmem:[%s838_s20] sm:$0xff]  ;;  %v721_v20 = vmov 0   ;;  %vm275_vm5 = vcmask 261120   ;;  %v304_v45 = vlaneseq  ;;  %s517_s25 = sshll.u32 %s769_s19, 7 }
  0xbf   : > { %v274_v17 = vpack.c.bf16 %v246_v15, %v245_v14  ;;  %v244_v18 = vld [vmem:[%s838_s20 + $0x8] sm:$0xff]  ;;  %v247_v19 = vmul.f32 %v243_v16, %v243_v16  ;;  %588 = vset.pattern.permute.xlu0 %v721_v20  ;;  %v249_v22 = vmul.f32 %v245_v14, %v245_v14  ;;  %589 = vset.pattern.permute.xlu2 %v721_v20  ;;  %v271_v25 = vld [vmem:[%s917_s0] sm:$0xff]  ;;  %v306_v48 = vstv %s517_s25  ;;  %s313_s5 = sadd.s32 128, %s517_s25  ;;  %v342_v13 = vld [vmem:[#allocation5] sm:$0xff]  ;;  %p518_p6 = scmp.ne.s32.totalorder %s769_s19, 1 }
  0xc0   : > { %v248_v23 = vmul.f32 %v244_v18, %v244_v18  ;;  %v273_v24 = vpack.c.bf16 %v244_v18, %v243_v16  ;;  %v250_v26 = vmul.f32 %v246_v15, %v246_v15  ;;  %v272_v29 = vpack.c.bf16 %v271_v25, %v271_v25  ;;  %v302_v30 = vld [vmem:[%s919_s2] sm:$0xff] }
  0xc1   : > { %285 = vmatpush.bf16.msra.mxu0 %v274_v17  ;;  %v305_v47 = vand.u32 127, %v304_v45  ;;  %v314_v5 = vstv %s313_s5  ;;  %vm312_vm13 = vcmp.ge.s32.totalorder %v302_v30, %v306_v48  ;;  %vm345_vm0 = vcmask 7168  }
  0xc2   : > { %v251_v27 = vadd.f32 %v248_v23, %v247_v19  ;;  %vm315_vm12 = vcmp.lt.s32.totalorder %v302_v30, %v314_v5  ;;  %v351_v19 = vld [vmem:[#allocation3] sm:$0xff] }
  0xc3   : > { %v307_v52 = vadd.s32 %v306_v48, %v305_v47  ;;  %vm316_vm14 = vmand %vm312_vm13, %vm315_vm12 }
  0xc4   : > { %v292_v21 = vld [vmem:[#allocation2] sm:$0xff]  ;;  %v252_v28 = vadd.f32 %v251_v27, %v249_v22 }
  0xc5   : > { %295 = vperm.xlu0 %588, %v292_v21   ;;  %286 = vmatpush.bf16.msra.mxu0 %v273_v24  ;;  %vm347_vm15 = vcmp.lt.s32.totalorder %v307_v52, 200 }
  0xc6   : > { %v253_v31 = vadd.f32 %v252_v28, %v250_v26 }
  0xc8   : > { %515 = vmatmul.msk.bf16.vlgmr.msra.gmra.mxu0 %vm275_vm5, %v272_v29  ;;  %v254_v32 = vrot.slane %v253_v31, 4  ;;  %v353_v29 = vld [vmem:[#allocation4] sm:$0xff] }
  0xca   : > { %v255_v33 = vadd.f32 %v254_v32, %v253_v31 }
  0xcc   : > { %v256_v34 = vrot.slane %v255_v33, 2 }
  0xcd   : > { %309 = vperm.xlu0 %588, %v302_v30  }
  0xce   : > { %v257_v35 = vadd.f32 %v256_v34, %v255_v33 }
  0xd0   : > { %v258_v36 = vrot.slane %v257_v35, 1 }
  0xd2   : > { %v259_v37 = vadd.f32 %v258_v36, %v257_v35 }
  0xd4   : > { %v260_v38 = vmax.f32 %v259_v37, 1e-24 }
  0xd6   : > { %590 = vrsqrt.f32 %v260_v38  ;;  %vm267_vm6 = vweird.f32 %v260_v38 }
  0xdc   : > { %v591_v39 = vpop.eup %590 }
  0xdd   : > { %v262_v40 = vmul.f32 %v591_v39, %v260_v38  ;;  %vm268_vm7 = vweird.f32 %v591_v39 }
  0xde   : > { %vm269_vm8 = vmor %vm267_vm6, %vm268_vm7 }
  0xdf   : > { %v263_v41 = vmul.f32 %v591_v39, %v262_v40 }
  0xe1   : > { %v264_v42 = vmul.f32 0.5, %v263_v41 }
  0xe3   : > { %v265_v43 = vsub.f32 1.5, %v264_v42 }
  0xe5   : > { %v266_v46 = vmul.f32 %v591_v39, %v265_v43 }
  0xe7   : > { %v270_v50 = vsel %vm269_vm8, %v591_v39, %v266_v46 }
 0x137   : > { %v296_v44 = vpop.permute.xlu0 %295 }
 0x13f   : > { %v310_v53 = vpop.permute.xlu0 %309 }
 0x140   : > { %vm311_vm9 = vcmp.eq.s32.totalorder %v307_v52, %v310_v53 }
 0x145   : > { %v288_v49 = vpop.f32.mrf.mxu0 }
 0x146   : > { %v298_v51 = vmul.f32 %v296_v44, %v288_v49 }
 0x148   : > { %v299_v54 = vmul.f32 %v298_v51, %v270_v50 }
 0x14a   : > { %v516_v55 = vclamps-f32 %v299_v54, 1.0 }
 0x14c   : > { %v317_v56 = vsel %vm311_vm9, %v516_v55, 0.0  ;;  %v339_v12 = vmul.f32 32.0, %v516_v55 }
 0x14d   : > { %v290_v57 = vpop.f32.mrf.mxu0  ;;  %318 = vadd.xlane.f32.xlu1 %v317_v56 }
 0x1c0   : > { %v319_v58 = vpop.xlane.xlu1 %318 }
 0x1c1   : > { %v320_v59 = vmul.f32 %v319_v58, %v319_v58  ;;  %v335_v9 = vmul.f32 0.87758255, %v319_v58 }
 0x1c3   : > { %v321_v60 = vsub.f32 1.0, %v320_v59 }
 0x1c5   : > { %v322_v61 = vmax.f32 %v321_v60, 1e-07 }
 0x1c7   : > { %592 = vrsqrt.f32 %v322_v61  ;;  %vm330_vm10 = vcmp.eq.f32.partialorder %v322_v61, inf  ;;  %v333_v6 = vand.u32 2147483648, %v322_v61  ;;  %vm332_vm11 = vcmp.eq.f32.partialorder %v322_v61, 0.0 }
 0x1cd   : > { %v593_v62 = vpop.eup %592 }
 0x1ce   : > { %v324_v63 = vmul.f32 %v593_v62, %v322_v61 }
 0x1d0   : > { %v325_v0 = vmul.f32 %v593_v62, %v324_v63 }
 0x1d2   : > { %v326_v1 = vmul.f32 0.5, %v325_v0 }
 0x1d4   : > { %v327_v2 = vsub.f32 1.5, %v326_v1 }
 0x1d6   : > { %v328_v3 = vmul.f32 %v593_v62, %v327_v2 }
 0x1d8   : > { %v329_v4 = vmul.f32 %v328_v3, %v322_v61 }
 0x1da   : > { %v331_v7 = vsel %vm330_vm10, %v322_v61, %v329_v4 }
 0x1db   : > { %v334_v8 = vsel %vm332_vm11, %v333_v6, %v331_v7 }
 0x1dc   : > { %v336_v10 = vmul.f32 0.47942555, %v334_v8 }
 0x1de   : > { %v337_v11 = vsub.f32 %v335_v9, %v336_v10 }
 0x1e0   : > { %v338_v14 = vmul.f32 32.0, %v337_v11 }
 0x1e2   : > { %v343_v15 = vsel %vm316_vm14, %v338_v14, 0.0  ;;  %v340_v16 = vsel %vm311_vm9, %v338_v14, %v339_v12 }
 0x1e3   : > { %v344_v17 = vadd.f32 %v343_v15, %v342_v13  ;;  %v348_v18 = vsel %vm347_vm15, %v340_v16, -1e+30  ;;  %341 = vst [vmem:[%s845_s11] sm:$0xff] %v340_v16 }
 0x1e4   : > { %349 = vmax.xlane.f32.xlu1 %v348_v18 }
 0x1e5   : > { %346 = vst.msk [vmem:[#allocation5] sm:$0xff] %vm345_vm0, %v344_v17 }
 0x257   : > { %v350_v20 = vpop.xlane.xlu1 %349 }
 0x258   : > { %v352_v21 = vmax.f32 %v351_v19, %v350_v20 }
 0x25a   : > { %v354_v22 = vsub.f32 %v351_v19, %v352_v21  ;;  %370 = vst.msk [vmem:[#allocation3] sm:$0xff] %vm345_vm0, %v352_v21  ;;  %360 = vperm.xlu2 %589, %v352_v21  }
 0x25c   : > { %v355_v27 = vmul.f32 1.442695, %v354_v22 }
 0x2b4   : > { %v361_v23 = vpop.permute.xlu2 %360 }
 0x2b5   : > { %v363_v24 = vsub.f32 %v348_v18, %v361_v23 }
 0x2b7   : > { %v364_v25 = vmul.f32 1.442695, %v363_v24 }
 0x2b9   : > { %594 = vpow2.f32 %v364_v25 }
 0x2ba   : > { %596 = vpow2.f32 %v355_v27 }
 0x2bf   : > { %v595_v26 = vpop.eup %594 }
 0x2c0   : > { %366 = vadd.xlane.f32.xlu2 %v595_v26  ;;  %v597_v28 = vpop.eup %596 }
 0x2c1   : > { %v357_v30 = vmul.f32 %v597_v28, %v353_v29 }
 0x332   : > { %374 = sbr.rel (%p518_p6) target bundleno = 1025 (0x401), region = 44 }
 0x333   : > { %v367_v31 = vpop.xlane.xlu2 %366 }
 0x334   : > { %v368_v32 = vadd.f32 %v367_v31, %v357_v30 }
 0x336   : > { %369 = vst.msk [vmem:[#allocation4] sm:$0xff] %vm345_vm0, %v368_v32 }
 0x337   : > { %v375_v35 = vld [vmem:[#allocation3] sm:$0xff]  ;;  %v380_v37 = vld [vmem:[#allocation5] sm:$0xff] }
 0x33d   : > { %v376_v33 = vld [vmem:[#allocation4] sm:$0xff] }
 0x33e   : > { %598 = vlog2.f32 %v376_v33 }
 0x344   : > { %v599_v34 = vpop.eup %598 }
 0x345   : > { %v378_v36 = vmul.f32 0.6931472, %v599_v34 }
 0x347   : > { %v379_v38 = vadd.f32 %v378_v36, %v375_v35 }
 0x349   : > { %v381_v39 = vsub.f32 %v379_v38, %v380_v37 }
 0x34b   : > { %v382_v40 = vsel %vm345_vm0, %v381_v39, 0.0 }
 0x34c   : > { %383 = vadd.xlane.f32.xlu0 %v382_v40 }
 0x3bf   : > { %v384_v41 = vpop.xlane.xlu0 %383 }
 0x3c0   : > { %v385_v42 = vrot.slane %v384_v41, 4 }
 0x3c2   : > { %v386_v43 = vadd.f32 %v385_v42, %v384_v41 }
 0x3c4   : > { %v387_v44 = vrot.slane %v386_v43, 2 }
 0x3c6   : > { %v388_v45 = vadd.f32 %v387_v44, %v386_v43 }
 0x3c8   : > { %v389_v46 = vrot.slane %v388_v45, 1 }
 0x3ca   : > { %v390_v47 = vadd.f32 %v389_v46, %v388_v45 }
 0x3cc   : > { %525 = vpush %v390_v47 }
 0x3fd   : > { %s526_s29 = spop %525 }
 0x3fe   : > { %s392_s6 = smul.f32 0.125, %s526_s29 }
 0x400   : > { %394 = sst [smem:[#allocation11]] %s392_s6 }
 0x401 PF: > { %s520_s7 = sshll.u32 %s769_s19, 3  ;;  %s408_s9 = sshll.u32 %s845_s11, 4  ;;  %s409_s9 = int_to_ptr.vmem [resolvable:$true] %s408_s9 }
 0x402   : > { %s406_s20 = scalar_lea.hbm %s920_s3, %s520_s7  ;;  %s420_s22 = sshll.u32 %s921_s4, 4  ;;  %s421_s22 = int_to_ptr.hbm [resolvable:$true] %s420_s22 }
 0x403   : > { %s410_s12 = sshll.u32 %s406_s20, 4  ;;  %s396_s23 = scalar_lea.sflag [#allocation8], %s834_s8  ;;  %s411_s12 = int_to_ptr.hbm [resolvable:$true] %s410_s12 }
 0x404   : > { %s644_s30 = sshra.s32 %s411_s12, 4  ;;  %s650_s6 = scalar_lea.hbm %s920_s3, 16  ;;  %s645_s30 = int_to_ptr.hbm [resolvable:$true] %s644_s30 }
 0x405   : > { %s646_s25 = scalar_lea.hbm %s645_s30, 8  ;;  %p651_p4 = scmp.lt.s32.totalorder %s645_s30, %s920_s3 }
 0x406   : > { %p647_p13 = scmp.ne.s32.totalorder %s645_s30, %s646_s25  ;;  %p652_p5 = scmp.lt.s32.totalorder %s650_s6, %s646_s25 }
 0x408   : > { %p648_p0 = pnand %p647_p13, %p800_p11  ;;  %p653_p8 = por %p652_p5, %p651_p4 }
 0x40a   : > { %p649_p3 = pneg %p648_p0 }
 0x40c   : > { %p654_p10 = pnand %p653_p8, %p649_p3 }
 0x40e   : > { %657 = shalt.err (!%p654_p10)
}
 0x40f   : > { %529 = dma.vmem_to_hbm [thread:$0]  (%p800_p11), %s409_s9, 128, %s411_s12, %s396_s23  }
 0x410   : > { %s722_s8 = smov [#allocation11]  }
 0x411   : > { %531 = dma.smem_to_hbm (%p108_p7), %s722_s8, 16, %s421_s22, [#allocation9]  }
 0x412   : > { %693 = dma.done.wait (%p108_p7), [#allocation9], 16  }
 0x413   : > { %695 = vsyncadd (%p108_p7), [#allocation9], 4294967280 }
 0x414   : > { %429 = sfence }
 0x415 PF: > { %s438_s10 = sand.u32 1, %s702_s15   ;;  %p927_p1 = scmp.ge.s32.totalorder %s714_s18, 2 }
 0x416   : > { %s439_s27 = scalar_lea.sflag [#allocation8], %s438_s10 }
 0x417   : > { %p540_p2 = pnand %p927_p1, %p804_p12 }
 0x419   : > { %p541_p9 = pneg %p540_p2 }
 0x41b   : > { %697 = dma.done.wait (%p541_p9), %s439_s27, 128  }
 0x41c   : > { %699 = vsyncadd (%p541_p9), %s439_s27, 4294967168  ;;  %p19_p11 = scmp.ge.s32.totalorder %s773_s21, 4   ;;  %s928_s15 = smov %s706_s16 }
 0x41d   : > { %s929_s16 = smov %s710_s17  ;;  %s930_s17 = smov %s785_s24 }
 0x41e   : > { %s931_s18 = smov %s773_s21  ;;  %21 = sbr.rel (!%p19_p11) target bundleno = 6 (0x6), region = 95 }
 0x423   :  { %445 = vsyncpa [#allocation7], 1 }
 0x424   :  { %447 = vsyncpa [#allocation7 + $0x1], 1 }
 0x425   :  { %448 = vsyncpa [#allocation8], 1 }
 0x426   :  { %450 = vsyncpa [#allocation8 + $0x1], 1 }
 0x427   :  { %451 = vsyncpa [#allocation9], 1 }
 0x428   :  { %453 = vsyncpa [#allocation9 + $0x1], 1 }

</bundles_post_ra>
